<compile_context>
chip_gen: v7x
topology: tpu7x:2x2x1
jax: 0.10.0
libtpu: 0.0.40
codegen_flags: <defaults>
</compile_context>

<pallas_src>
import functools

import jax
import jax.numpy as jnp
from jax.experimental import pallas as pl
from jax.experimental.pallas import tpu as pltpu

HIDDEN_SIZE = 32   # hp.HIDDEN_SIZE (synthetic)
NUM_LAYERS = 2     # hp.NUM_LAYERS  (synthetic)
INPUT_SIZE = 3     # cat([x, y, t], dim=-1)


def _make_lstm_pinn_kernel(num_layers: int, hidden: int):
    """Kernel ref order:
         x_ref (1, NB), y_ref (1, NB), t_ref (1, NB),
         layer 0: w0x (4H,1), w0y (4H,1), w0t (4H,1), b0 (4H,1),
         layers 1..L-1: w_l (4H,H), b_l (4H,1),
         fc_w (H, 1), fc_b (1, 1) [SMEM],
         out_ref (1, NB).
    """
    H = hidden

    def lstm_cell(gates):
        # gates: (4H, NB); sublane slices at multiples of H (H % 8 == 0).
        i_g = jax.nn.sigmoid(gates[0 * H:1 * H, :])
        # f gate multiplies c_0 == 0 -> contributes nothing (kept implicit).
        g_g = jnp.tanh(gates[2 * H:3 * H, :])
        o_g = jax.nn.sigmoid(gates[3 * H:4 * H, :])
        c = i_g * g_g
        return o_g * jnp.tanh(c)           # (H, NB)

    def kernel(x_ref, y_ref, t_ref, *refs):
        out_ref = refs[-1]
        fc_b_ref = refs[-2]                # (1, 1) in SMEM
        fc_w_ref = refs[-3]                # (H, 1)
        params = refs[:-3]

        # ---- Layer 0: K == 3 -> three VPU broadcast FMAs (skip MXU). ----
        w0x = params[0][...]               # (4H, 1) lane-broadcast
        w0y = params[1][...]
        w0t = params[2][...]
        b0 = params[3][...]                # (4H, 1) = b_ih + b_hh
        gates = (w0x * x_ref[...] + w0y * y_ref[...]
                 + w0t * t_ref[...] + b0)  # (4H, NB)
        h = lstm_cell(gates)               # (H, NB)

        # ---- Layers 1 .. L-1: (4H, H) @ (H, NB) on the MXU, f32 acc. ----
        for l in range(1, num_layers):
            w = params[4 + 2 * (l - 1)][...]       # (4H, H)
            b = params[4 + 2 * (l - 1) + 1][...]   # (4H, 1)
            gates = jnp.dot(w, h, preferred_element_type=jnp.float32) + b
            h = lstm_cell(gates)

        # ---- Final Linear(H, 1): broadcast-mul + sublane reduce. ----
        fc_w = fc_w_ref[...]               # (H, 1)
        out_ref[...] = (jnp.sum(h * fc_w, axis=0, keepdims=True)
                        + fc_b_ref[0, 0])  # (1, NB), lane-dense store

    return kernel


def init_params(key, input_size=INPUT_SIZE, hidden=HIDDEN_SIZE,
                num_layers=NUM_LAYERS):
    """Deterministic PyTorch-style init: U(-1/sqrt(H), 1/sqrt(H))."""
    params = {}
    bound = 1.0 / jnp.sqrt(jnp.float32(hidden))
    for l in range(num_layers):
        in_l = input_size if l == 0 else hidden
        key, k1, k2, k3, k4 = jax.random.split(key, 5)
        params[f"w_ih_{l}"] = jax.random.uniform(
            k1, (4 * hidden, in_l), jnp.float32, -bound, bound)
        params[f"w_hh_{l}"] = jax.random.uniform(   # unused at t=0 (h_0 = 0)
            k2, (4 * hidden, hidden), jnp.float32, -bound, bound)
        params[f"b_ih_{l}"] = jax.random.uniform(
            k3, (4 * hidden,), jnp.float32, -bound, bound)
        params[f"b_hh_{l}"] = jax.random.uniform(
            k4, (4 * hidden,), jnp.float32, -bound, bound)
    key, k1, k2 = jax.random.split(key, 3)
    fc_bound = 1.0 / jnp.sqrt(jnp.float32(hidden))
    params["fc_w"] = jax.random.uniform(k1, (1, hidden), jnp.float32,
                                        -fc_bound, fc_bound)
    params["fc_b"] = jax.random.uniform(k2, (1,), jnp.float32,
                                        -fc_bound, fc_bound)
    return params


@functools.partial(jax.jit, static_argnames=("hidden", "num_layers", "block_n"))
def lstm_pinn_forward(x, y, t, params, hidden=HIDDEN_SIZE,
                      num_layers=NUM_LAYERS, block_n=2048):
    H = hidden
    n = x.shape[0]

    # --- batch-in-lanes layout: each input as a (1, N) row, padded ---
    block_n = max(128, (block_n // 128) * 128)       # force 128-multiple block
    n_min = ((n + 127) // 128) * 128                 # at least a 128 multiple
    nb = min(block_n, n_min)                         # lane block (mult. of 128)
    n_pad = ((n_min + nb - 1) // nb) * nb            # total, multiple of nb
    pad = n_pad - n

    def to_row(a):
        return jnp.pad(a.astype(jnp.float32).reshape(1, n), ((0, 0), (0, pad)))

    xr, yr, tr = to_row(x), to_row(y), to_row(t)

    row_spec = pl.BlockSpec((1, nb), lambda i: (0, i))

    def const_spec(shape):                           # VMEM-resident weights
        return pl.BlockSpec(shape, lambda i: (0, 0))

    kernel_inputs = [xr, yr, tr]
    in_specs = [row_spec, row_spec, row_spec]

    # Layer 0: pre-split W_ih columns (x, y, t) -> three (4H, 1) arrays.
    w0 = params["w_ih_0"]                            # (4H, 3)
    b0 = (params["b_ih_0"] + params["b_hh_0"]).reshape(4 * H, 1)
    for col in range(3):
        kernel_inputs.append(w0[:, col:col + 1])     # (4H, 1)
        in_specs.append(const_spec((4 * H, 1)))
    kernel_inputs.append(b0)
    in_specs.append(const_spec((4 * H, 1)))

    # Layers 1 .. L-1: W_ih as-is (4H, H) -> gates_T = W @ h_T.
    for l in range(1, num_layers):
        w = params[f"w_ih_{l}"]                      # (4H, H)
        b = (params[f"b_ih_{l}"] + params[f"b_hh_{l}"]).reshape(4 * H, 1)
        kernel_inputs += [w, b]
        in_specs += [const_spec((4 * H, H)), const_spec((4 * H, 1))]

    # Final Linear: fc_w as a (H, 1) column; fc_b as an SMEM scalar.
    kernel_inputs.append(params["fc_w"].reshape(H, 1))
    in_specs.append(const_spec((H, 1)))
    kernel_inputs.append(params["fc_b"].reshape(1, 1))
    in_specs.append(pl.BlockSpec(memory_space=pltpu.MemorySpace.SMEM))

    # Advisory cost estimate for XLA's scheduler.
    param_elems = sum(int(a.size) for a in kernel_inputs[3:])
    flops = n_pad * (2 * 3 * 4 * H                       # layer-0 FMAs
                     + (num_layers - 1) * 2 * H * 4 * H  # MXU layers
                     + num_layers * 6 * H                # gate elementwise
                     + 2 * H)                            # final projection
    transcendentals = n_pad * num_layers * 4 * H         # 2x sigmoid + 2x tanh
    bytes_accessed = 4 * (4 * n_pad + param_elems)

    out = pl.pallas_call(
        _make_lstm_pinn_kernel(num_layers, hidden),
        out_shape=jax.ShapeDtypeStruct((1, n_pad), jnp.float32),
        grid=(n_pad // nb,),
        in_specs=in_specs,
        out_specs=pl.BlockSpec((1, nb), lambda i: (0, i)),
        compiler_params=pltpu.CompilerParams(
            dimension_semantics=("parallel",)),      # 2-TC sharding on v7x
        cost_estimate=pl.CostEstimate(flops=flops,
                                      transcendentals=transcendentals,
                                      bytes_accessed=bytes_accessed),
    )(*kernel_inputs)

    return out[0, :n].reshape(n, 1)


def _reference_forward(x, y, t, params, hidden=HIDDEN_SIZE,
                       num_layers=NUM_LAYERS):
    """Pure-JAX reference mirroring the PyTorch forward (seq_len == 1)."""
    inp = jnp.concatenate([x, y, t], axis=-1).astype(jnp.float32)
    n = inp.shape[0]
    h_in = inp
    for l in range(num_layers):
        h0 = jnp.zeros((n, hidden), jnp.float32)
        c0 = jnp.zeros((n, hidden), jnp.float32)
        gates = (h_in @ params[f"w_ih_{l}"].T + h0 @ params[f"w_hh_{l}"].T
                 + params[f"b_ih_{l}"] + params[f"b_hh_{l}"])
        i, f, g, o = jnp.split(gates, 4, axis=-1)
        c = jax.nn.sigmoid(f) * c0 + jax.nn.sigmoid(i) * jnp.tanh(g)
        h_in = jax.nn.sigmoid(o) * jnp.tanh(c)
    return h_in @ params["fc_w"].T + params["fc_b"]


if __name__ == "__main__":
    key = jax.random.PRNGKey(0)
    kp, kx, ky, kt = jax.random.split(key, 4)

    params = init_params(kp)

    # Small demo: N = 8 collocation points (pads to one 128-lane block).
    N = 8
    x = jax.random.uniform(kx, (N, 1), jnp.float32)
    y = jax.random.uniform(ky, (N, 1), jnp.float32)
    t = jax.random.uniform(kt, (N, 1), jnp.float32)

    out = lstm_pinn_forward(x, y, t, params)
    out = jax.block_until_ready(out)
    ref = _reference_forward(x, y, t, params)
    assert out.shape == (N, 1)
    assert jnp.allclose(out, ref, atol=1e-5, rtol=1e-4)

    # Second check: multi-block grid with a ragged batch (padding path).
    N2 = 389
    k2x, k2y, k2t = jax.random.split(kt, 3)
    x2 = jax.random.uniform(k2x, (N2, 1), jnp.float32)
    y2 = jax.random.uniform(k2y, (N2, 1), jnp.float32)
    t2 = jax.random.uniform(k2t, (N2, 1), jnp.float32)
    out2 = jax.block_until_ready(
        lstm_pinn_forward(x2, y2, t2, params, block_n=128))
    ref2 = _reference_forward(x2, y2, t2, params)
    assert out2.shape == (N2, 1)
    assert jnp.allclose(out2, ref2, atol=1e-5, rtol=1e-4)

    print("KERNEL_OK")
</pallas_src>

<mosaic_0001>
module attributes {stable_mosaic.version = 11 : i64} {
  func.func @kernel(%arg0: i32, %arg1: memref<1x128xf32, #tpu.memory_space<vmem>>, %arg2: memref<1x128xf32, #tpu.memory_space<vmem>>, %arg3: memref<1x128xf32, #tpu.memory_space<vmem>>, %arg4: memref<128x1xf32, #tpu.memory_space<vmem>>, %arg5: memref<128x1xf32, #tpu.memory_space<vmem>>, %arg6: memref<128x1xf32, #tpu.memory_space<vmem>>, %arg7: memref<128x1xf32, #tpu.memory_space<vmem>>, %arg8: memref<128x32xf32, #tpu.memory_space<vmem>>, %arg9: memref<128x1xf32, #tpu.memory_space<vmem>>, %arg10: memref<32x1xf32, #tpu.memory_space<vmem>>, %arg11: memref<1x1xf32, #tpu.memory_space<smem>>, %arg12: memref<1x128xf32, #tpu.memory_space<vmem>>) attributes {dimension_semantics = [#tpu.dimension_semantics<parallel>], iteration_bounds = array<i64: 1>, scalar_prefetch = 0 : i64, scratch_operands = 0 : i64, tpu.core_type = #tpu.core_type<tc>, window_params = [{transform_indices = @transform_0, window_bounds = array<i64: 1, 128>}, {transform_indices = @transform_1, window_bounds = array<i64: 1, 128>}, {transform_indices = @transform_2, window_bounds = array<i64: 1, 128>}, {pipeline_mode = #tpu.pipeline_mode<synchronous>, transform_indices = @transform_3, window_bounds = array<i64: 128, 1>}, {pipeline_mode = #tpu.pipeline_mode<synchronous>, transform_indices = @transform_4, window_bounds = array<i64: 128, 1>}, {pipeline_mode = #tpu.pipeline_mode<synchronous>, transform_indices = @transform_5, window_bounds = array<i64: 128, 1>}, {pipeline_mode = #tpu.pipeline_mode<synchronous>, transform_indices = @transform_6, window_bounds = array<i64: 128, 1>}, {pipeline_mode = #tpu.pipeline_mode<synchronous>, transform_indices = @transform_7, window_bounds = array<i64: 128, 32>}, {pipeline_mode = #tpu.pipeline_mode<synchronous>, transform_indices = @transform_8, window_bounds = array<i64: 128, 1>}, {pipeline_mode = #tpu.pipeline_mode<synchronous>, transform_indices = @transform_9, window_bounds = array<i64: 32, 1>}, {transform_indices = @transform_10, window_bounds = array<i64: 1, 1>}, {transform_indices = @transform_11, window_bounds = array<i64: 1, 128>}]} {
    %c0 = arith.constant 0 : index
    %c0_0 = arith.constant 0 : index
    %0 = vector.load %arg4[%c0, %c0_0] : memref<128x1xf32, #tpu.memory_space<vmem>>, vector<128x1xf32>
    %c0_1 = arith.constant 0 : index
    %c0_2 = arith.constant 0 : index
    %1 = vector.load %arg5[%c0_1, %c0_2] : memref<128x1xf32, #tpu.memory_space<vmem>>, vector<128x1xf32>
    %c0_3 = arith.constant 0 : index
    %c0_4 = arith.constant 0 : index
    %2 = vector.load %arg6[%c0_3, %c0_4] : memref<128x1xf32, #tpu.memory_space<vmem>>, vector<128x1xf32>
    %c0_5 = arith.constant 0 : index
    %c0_6 = arith.constant 0 : index
    %3 = vector.load %arg7[%c0_5, %c0_6] : memref<128x1xf32, #tpu.memory_space<vmem>>, vector<128x1xf32>
    %c0_7 = arith.constant 0 : index
    %c0_8 = arith.constant 0 : index
    %4 = vector.load %arg1[%c0_7, %c0_8] : memref<1x128xf32, #tpu.memory_space<vmem>>, vector<1x128xf32>
    %5 = vector.broadcast %0 : vector<128x1xf32> to vector<128x128xf32>
    %6 = vector.broadcast %4 : vector<1x128xf32> to vector<128x128xf32>
    %7 = arith.mulf %5, %6 : vector<128x128xf32>
    %c0_9 = arith.constant 0 : index
    %c0_10 = arith.constant 0 : index
    %8 = vector.load %arg2[%c0_9, %c0_10] : memref<1x128xf32, #tpu.memory_space<vmem>>, vector<1x128xf32>
    %9 = vector.broadcast %1 : vector<128x1xf32> to vector<128x128xf32>
    %10 = vector.broadcast %8 : vector<1x128xf32> to vector<128x128xf32>
    %11 = arith.mulf %9, %10 : vector<128x128xf32>
    %12 = arith.addf %7, %11 : vector<128x128xf32>
    %c0_11 = arith.constant 0 : index
    %c0_12 = arith.constant 0 : index
    %13 = vector.load %arg3[%c0_11, %c0_12] : memref<1x128xf32, #tpu.memory_space<vmem>>, vector<1x128xf32>
    %14 = vector.broadcast %2 : vector<128x1xf32> to vector<128x128xf32>
    %15 = vector.broadcast %13 : vector<1x128xf32> to vector<128x128xf32>
    %16 = arith.mulf %14, %15 : vector<128x128xf32>
    %17 = arith.addf %12, %16 : vector<128x128xf32>
    %18 = vector.broadcast %3 : vector<128x1xf32> to vector<128x128xf32>
    %19 = arith.addf %17, %18 : vector<128x128xf32>
    %20 = vector.extract_strided_slice %19 {offsets = [0, 0], sizes = [32, 128], strides = [1, 1]} : vector<128x128xf32> to vector<32x128xf32>
    %21 = arith.negf %20 : vector<32x128xf32>
    %22 = math.exp %21 : vector<32x128xf32>
    %cst = arith.constant 1.000000e+00 : f32
    %23 = vector.broadcast %cst : f32 to vector<32x128xf32>
    %24 = arith.addf %23, %22 : vector<32x128xf32>
    %25 = arith.divf %23, %24 : vector<32x128xf32>
    %26 = vector.extract_strided_slice %19 {offsets = [64, 0], sizes = [32, 128], strides = [1, 1]} : vector<128x128xf32> to vector<32x128xf32>
    %27 = math.tanh %26 : vector<32x128xf32>
    %28 = vector.extract_strided_slice %19 {offsets = [96, 0], sizes = [32, 128], strides = [1, 1]} : vector<128x128xf32> to vector<32x128xf32>
    %29 = arith.negf %28 : vector<32x128xf32>
    %30 = math.exp %29 : vector<32x128xf32>
    %cst_13 = arith.constant 1.000000e+00 : f32
    %31 = vector.broadcast %cst_13 : f32 to vector<32x128xf32>
    %32 = arith.addf %31, %30 : vector<32x128xf32>
    %33 = arith.divf %31, %32 : vector<32x128xf32>
    %34 = arith.mulf %25, %27 : vector<32x128xf32>
    %35 = math.tanh %34 : vector<32x128xf32>
    %36 = arith.mulf %33, %35 : vector<32x128xf32>
    %c0_14 = arith.constant 0 : index
    %c0_15 = arith.constant 0 : index
    %37 = vector.load %arg8[%c0_14, %c0_15] : memref<128x32xf32, #tpu.memory_space<vmem>>, vector<128x32xf32>
    %c0_16 = arith.constant 0 : index
    %c0_17 = arith.constant 0 : index
    %38 = vector.load %arg9[%c0_16, %c0_17] : memref<128x1xf32, #tpu.memory_space<vmem>>, vector<128x1xf32>
    %cst_18 = arith.constant dense<0.000000e+00> : vector<128x128xf32>
    %39 = tpu.matmul %37, %36, %cst_18 {dimension_numbers = #tpu.dot_dimension_numbers<[1], [0], [0], [1], [0, 0, 1, 1], [], []>} : vector<128x32xf32>, vector<32x128xf32>, vector<128x128xf32> -> vector<128x128xf32>
    %40 = vector.broadcast %38 : vector<128x1xf32> to vector<128x128xf32>
    %41 = arith.addf %39, %40 : vector<128x128xf32>
    %42 = vector.extract_strided_slice %41 {offsets = [0, 0], sizes = [32, 128], strides = [1, 1]} : vector<128x128xf32> to vector<32x128xf32>
    %43 = arith.negf %42 : vector<32x128xf32>
    %44 = math.exp %43 : vector<32x128xf32>
    %cst_19 = arith.constant 1.000000e+00 : f32
    %45 = vector.broadcast %cst_19 : f32 to vector<32x128xf32>
    %46 = arith.addf %45, %44 : vector<32x128xf32>
    %47 = arith.divf %45, %46 : vector<32x128xf32>
    %48 = vector.extract_strided_slice %41 {offsets = [64, 0], sizes = [32, 128], strides = [1, 1]} : vector<128x128xf32> to vector<32x128xf32>
    %49 = math.tanh %48 : vector<32x128xf32>
    %50 = vector.extract_strided_slice %41 {offsets = [96, 0], sizes = [32, 128], strides = [1, 1]} : vector<128x128xf32> to vector<32x128xf32>
    %51 = arith.negf %50 : vector<32x128xf32>
    %52 = math.exp %51 : vector<32x128xf32>
    %cst_20 = arith.constant 1.000000e+00 : f32
    %53 = vector.broadcast %cst_20 : f32 to vector<32x128xf32>
    %54 = arith.addf %53, %52 : vector<32x128xf32>
    %55 = arith.divf %53, %54 : vector<32x128xf32>
    %56 = arith.mulf %47, %49 : vector<32x128xf32>
    %57 = math.tanh %56 : vector<32x128xf32>
    %58 = arith.mulf %55, %57 : vector<32x128xf32>
    %c0_21 = arith.constant 0 : index
    %c0_22 = arith.constant 0 : index
    %59 = vector.load %arg10[%c0_21, %c0_22] : memref<32x1xf32, #tpu.memory_space<vmem>>, vector<32x1xf32>
    %60 = vector.broadcast %59 : vector<32x1xf32> to vector<32x128xf32>
    %61 = arith.mulf %58, %60 : vector<32x128xf32>
    %cst_23 = arith.constant dense<0.000000e+00> : vector<128xf32>
    %62 = vector.multi_reduction <add>, %61, %cst_23 [0] : vector<32x128xf32> to vector<128xf32>
    %63 = vector.shape_cast %62 : vector<128xf32> to vector<1x128xf32>
    %c0_24 = arith.constant 0 : index
    %c0_25 = arith.constant 0 : index
    %64 = memref.load %arg11[%c0_24, %c0_25] : memref<1x1xf32, #tpu.memory_space<smem>>
    %65 = vector.broadcast %64 : f32 to vector<1x128xf32>
    %66 = arith.addf %63, %65 : vector<1x128xf32>
    %c0_26 = arith.constant 0 : index
    %c0_27 = arith.constant 0 : index
    %67 = vector.load %arg12[%c0_26, %c0_27] : memref<1x128xf32, #tpu.memory_space<vmem>>, vector<1x128xf32>
    tpu.vector_store %arg12[%c0_26, %c0_27], %66 {strides = array<i32>} : memref<1x128xf32, #tpu.memory_space<vmem>>, vector<1x128xf32>,
    return
  }
  func.func @transform_0(%arg0: i32) -> (i32, i32) {
    %c0_i32 = arith.constant 0 : i32
    %c0_i32_0 = arith.constant 0 : i32
    return %c0_i32, %arg0 : i32, i32
  }
  func.func @transform_1(%arg0: i32) -> (i32, i32) {
    %c0_i32 = arith.constant 0 : i32
    %c0_i32_0 = arith.constant 0 : i32
    return %c0_i32, %arg0 : i32, i32
  }
  func.func @transform_2(%arg0: i32) -> (i32, i32) {
    %c0_i32 = arith.constant 0 : i32
    %c0_i32_0 = arith.constant 0 : i32
    return %c0_i32, %arg0 : i32, i32
  }
  func.func @transform_3(%arg0: i32) -> (i32, i32) {
    %c0_i32 = arith.constant 0 : i32
    %c0_i32_0 = arith.constant 0 : i32
    %c0_i32_1 = arith.constant 0 : i32
    return %c0_i32, %c0_i32_0 : i32, i32
  }
  func.func @transform_4(%arg0: i32) -> (i32, i32) {
    %c0_i32 = arith.constant 0 : i32
    %c0_i32_0 = arith.constant 0 : i32
    %c0_i32_1 = arith.constant 0 : i32
    return %c0_i32, %c0_i32_0 : i32, i32
  }
  func.func @transform_5(%arg0: i32) -> (i32, i32) {
    %c0_i32 = arith.constant 0 : i32
    %c0_i32_0 = arith.constant 0 : i32
    %c0_i32_1 = arith.constant 0 : i32
    return %c0_i32, %c0_i32_0 : i32, i32
  }
  func.func @transform_6(%arg0: i32) -> (i32, i32) {
    %c0_i32 = arith.constant 0 : i32
    %c0_i32_0 = arith.constant 0 : i32
    %c0_i32_1 = arith.constant 0 : i32
    return %c0_i32, %c0_i32_0 : i32, i32
  }
  func.func @transform_7(%arg0: i32) -> (i32, i32) {
    %c0_i32 = arith.constant 0 : i32
    %c0_i32_0 = arith.constant 0 : i32
    %c0_i32_1 = arith.constant 0 : i32
    return %c0_i32, %c0_i32_0 : i32, i32
  }
  func.func @transform_8(%arg0: i32) -> (i32, i32) {
    %c0_i32 = arith.constant 0 : i32
    %c0_i32_0 = arith.constant 0 : i32
    %c0_i32_1 = arith.constant 0 : i32
    return %c0_i32, %c0_i32_0 : i32, i32
  }
  func.func @transform_9(%arg0: i32) -> (i32, i32) {
    %c0_i32 = arith.constant 0 : i32
    %c0_i32_0 = arith.constant 0 : i32
    %c0_i32_1 = arith.constant 0 : i32
    return %c0_i32, %c0_i32_0 : i32, i32
  }
  func.func @transform_10(%arg0: i32) -> (i32, i32) {
    %c0_i32 = arith.constant 0 : i32
    %c0_i32_0 = arith.constant 0 : i32
    %c0_i32_1 = arith.constant 0 : i32
    return %c0_i32, %c0_i32_0 : i32, i32
  }
  func.func @transform_11(%arg0: i32) -> (i32, i32) {
    %c0_i32 = arith.constant 0 : i32
    %c0_i32_0 = arith.constant 0 : i32
    return %c0_i32, %arg0 : i32, i32
  }
}

</mosaic_0001>

<bundles_post_ra>
// kernel: lstm_pinn_forward.1
= control target key start
LH: loop header
LB: loop body
LE: loop exit
PB: predicated region body
PF: predicated region fallthrough
CT: control target
= control target key end

     0   :  { %v1089_v0 = vmov 0   ;;  %vm592_vm0 = vcmask 261120   ;;  %s1490_s4 = inlined_call_operand.vmem [shape: f32[128,1], index: 4, kind: input, shape index: {}]   ;;  %s1491_s3 = inlined_call_operand.vmem [shape: f32[128,1], index: 3, kind: input, shape index: {}]   ;;  %s1492_s5 = inlined_call_operand.vmem [shape: f32[128,1], index: 5, kind: input, shape index: {}]   ;;  %s1493_s6 = inlined_call_operand.vmem [shape: f32[128,1], index: 6, kind: input, shape index: {}]   ;;  %s1494_s8 = inlined_call_operand.vmem [shape: f32[128,1], index: 8, kind: input, shape index: {}]   ;;  %s1495_s9 = inlined_call_operand.vmem [shape: f32[32,1], index: 9, kind: input, shape index: {}]   ;;  %s1496_s7 = inlined_call_operand.vmem [shape: f32[128,32], index: 7, kind: input, shape index: {}]   ;;  %s1497_s1 = inlined_call_operand.vmem [shape: f32[1,128], index: 1, kind: input, shape index: {}]   ;;  %s1498_s0 = inlined_call_operand.vmem [shape: f32[1,128], index: 0, kind: input, shape index: {}]   ;;  %s1499_s2 = inlined_call_operand.vmem [shape: f32[1,128], index: 2, kind: input, shape index: {}]   ;;  %s1500_s10 = inlined_call_operand.<no memory space> [shape: f32[1,1], index: 10, kind: input, shape index: {}]   ;;  %s1501_s11 = inlined_call_operand.vmem [shape: f32[1,128], index: 11, kind: output, shape index: {}]  }
   0x1   :  { %992 = vset.pattern.permute.xlu1 %v1089_v0  ;;  %991 = vset.pattern.permute.xlu0 %v1089_v0  ;;  %v51_v1 = vld [vmem:[%s1490_s4] sm:$0xff]  ;;  %v52_v3 = vld [vmem:[%s1490_s4 + $0x8] sm:$0xff]  ;;  %v42_v7 = vld [vmem:[%s1491_s3 + $0x18] sm:$0xff] }
   0x2   :  { %v39_v2 = vld [vmem:[%s1491_s3] sm:$0xff]  ;;  %169 = vperm.xlu1 %992, %v51_v1   ;;  %v40_v4 = vld [vmem:[%s1491_s3 + $0x8] sm:$0xff]  ;;  %v41_v8 = vld [vmem:[%s1491_s3 + $0x10] sm:$0xff] }
   0x3   :  { %90 = vperm.xlu0 %991, %v39_v2   ;;  %v64_v5 = vld [vmem:[%s1492_s5 + $0x8] sm:$0xff]  ;;  %v63_v6 = vld [vmem:[%s1492_s5] sm:$0xff]  ;;  %v54_v9 = vld [vmem:[%s1490_s4 + $0x18] sm:$0xff] }
   0x4   :  { %v53_v10 = vld [vmem:[%s1490_s4 + $0x10] sm:$0xff]  ;;  %v66_v11 = vld [vmem:[%s1492_s5 + $0x18] sm:$0xff]  ;;  %v76_v13 = vld [vmem:[%s1493_s6 + $0x8] sm:$0xff] }
   0x5   :  { %v65_v12 = vld [vmem:[%s1492_s5 + $0x10] sm:$0xff]  ;;  %v75_v14 = vld [vmem:[%s1493_s6] sm:$0xff]  ;;  %v78_v15 = vld [vmem:[%s1493_s6 + $0x18] sm:$0xff] }
   0x6   :  { %174 = vperm.xlu1 %992, %v52_v3   ;;  %v77_v16 = vld [vmem:[%s1493_s6 + $0x10] sm:$0xff]  ;;  %v48_v17 = vld [vmem:[%s1491_s3 + $0x68] sm:$0xff]  ;;  %v47_v18 = vld [vmem:[%s1491_s3 + $0x60] sm:$0xff] }
   0x7   :  { %95 = vperm.xlu0 %991, %v40_v4   ;;  %v60_v19 = vld [vmem:[%s1490_s4 + $0x68] sm:$0xff]  ;;  %v59_v20 = vld [vmem:[%s1490_s4 + $0x60] sm:$0xff]  ;;  %v50_v27 = vld [vmem:[%s1491_s3 + $0x78] sm:$0xff] }
   0x8   :  { %v44_v21 = vld [vmem:[%s1491_s3 + $0x48] sm:$0xff]  ;;  %v43_v22 = vld [vmem:[%s1491_s3 + $0x40] sm:$0xff]  ;;  %v49_v28 = vld [vmem:[%s1491_s3 + $0x70] sm:$0xff] }
   0x9   :  { %v56_v23 = vld [vmem:[%s1490_s4 + $0x48] sm:$0xff]  ;;  %v55_v24 = vld [vmem:[%s1490_s4 + $0x40] sm:$0xff]  ;;  %v62_v29 = vld [vmem:[%s1490_s4 + $0x78] sm:$0xff] }
   0xa   :  { %265 = vperm.xlu1 %992, %v64_v5   ;;  %v72_v25 = vld [vmem:[%s1492_s5 + $0x68] sm:$0xff]  ;;  %v71_v26 = vld [vmem:[%s1492_s5 + $0x60] sm:$0xff]  ;;  %v61_v30 = vld [vmem:[%s1490_s4 + $0x70] sm:$0xff] }
   0xb   :  { %260 = vperm.xlu0 %991, %v63_v6   ;;  %v68_v31 = vld [vmem:[%s1492_s5 + $0x48] sm:$0xff]  ;;  %v67_v32 = vld [vmem:[%s1492_s5 + $0x40] sm:$0xff]  ;;  %v46_v33 = vld [vmem:[%s1491_s3 + $0x58] sm:$0xff] }
   0xc   :  { %v45_v34 = vld [vmem:[%s1491_s3 + $0x50] sm:$0xff]  ;;  %v58_v35 = vld [vmem:[%s1490_s4 + $0x58] sm:$0xff]  ;;  %v84_v39 = vld [vmem:[%s1493_s6 + $0x68] sm:$0xff] }
   0xd   :  { %v57_v36 = vld [vmem:[%s1490_s4 + $0x50] sm:$0xff]  ;;  %v74_v37 = vld [vmem:[%s1492_s5 + $0x78] sm:$0xff]  ;;  %v83_v40 = vld [vmem:[%s1493_s6 + $0x60] sm:$0xff] }
   0xe   :  { %105 = vperm.xlu1 %992, %v42_v7   ;;  %v73_v38 = vld [vmem:[%s1492_s5 + $0x70] sm:$0xff]  ;;  %v70_v41 = vld [vmem:[%s1492_s5 + $0x58] sm:$0xff]  ;;  %v80_v43 = vld [vmem:[%s1493_s6 + $0x48] sm:$0xff] }
   0xf   :  { %100 = vperm.xlu0 %991, %v41_v8   ;;  %v69_v42 = vld [vmem:[%s1492_s5 + $0x50] sm:$0xff]  ;;  %v79_v44 = vld [vmem:[%s1493_s6 + $0x40] sm:$0xff]  ;;  %v86_v45 = vld [vmem:[%s1493_s6 + $0x78] sm:$0xff] }
  0x10   :  { %v85_v46 = vld [vmem:[%s1493_s6 + $0x70] sm:$0xff]  ;;  %v82_v47 = vld [vmem:[%s1493_s6 + $0x58] sm:$0xff]  ;;  %v501_v49 = vld [vmem:[%s1494_s8 + $0x8] sm:$0xff] }
  0x11   :  { %v81_v48 = vld [vmem:[%s1493_s6 + $0x50] sm:$0xff]  ;;  %v500_v50 = vld [vmem:[%s1494_s8] sm:$0xff]  ;;  %v503_v51 = vld [vmem:[%s1494_s8 + $0x18] sm:$0xff] }
  0x12   :  { %184 = vperm.xlu1 %992, %v54_v9   ;;  %v502_v52 = vld [vmem:[%s1494_s8 + $0x10] sm:$0xff]  ;;  %v513_v53 = vld [vmem:[%s1494_s8 + $0x68] sm:$0xff]  ;;  %v512_v54 = vld [vmem:[%s1494_s8 + $0x60] sm:$0xff] }
  0x13   :  { %179 = vperm.xlu0 %991, %v53_v10   ;;  %v509_v55 = vld [vmem:[%s1494_s8 + $0x48] sm:$0xff]  ;;  %v508_v56 = vld [vmem:[%s1494_s8 + $0x40] sm:$0xff]  ;;  %v510_v57 = vld [vmem:[%s1494_s8 + $0x50] sm:$0xff] }
  0x14   :  { %v514_v58 = vld [vmem:[%s1494_s8 + $0x70] sm:$0xff]  ;;  %v511_v59 = vld [vmem:[%s1494_s8 + $0x58] sm:$0xff]  ;;  %v847_v61 = vld [vmem:[%s1495_s9 + $0x8] sm:$0xff] }
  0x15   :  { %v515_v60 = vld [vmem:[%s1494_s8 + $0x78] sm:$0xff]  ;;  %v846_v62 = vld [vmem:[%s1495_s9] sm:$0xff]  ;;  %v848_v0 = vld [vmem:[%s1495_s9 + $0x10] sm:$0xff] }
  0x16   :  { %275 = vperm.xlu1 %992, %v66_v11   ;;  %v849_v63 = vld [vmem:[%s1495_s9 + $0x18] sm:$0xff]  ;;  %v484_v3 = vld [vmem:[%s1496_s7] sm:$0xff] }
  0x17   :  { %270 = vperm.xlu0 %991, %v65_v12   ;;  %v492_v4 = vld [vmem:[%s1496_s7 + $0x40] sm:$0xff]  ;;  %954 = vmatprep.mubr.msk.f32.mxu0 %vm592_vm0, %v484_v3 }
  0x18   :  { %966 = vmatprep.mubr.msk.f32.mxu1 %vm592_vm0, %v492_v4 }
  0x1a   :  { %355 = vperm.xlu1 %992, %v76_v13  }
  0x1b   :  { %350 = vperm.xlu0 %991, %v75_v14  }
  0x1e   :  { %365 = vperm.xlu1 %992, %v78_v15  }
  0x1f   :  { %360 = vperm.xlu0 %991, %v77_v16  }
  0x22   :  { %135 = vperm.xlu1 %992, %v48_v17  }
  0x23   :  { %130 = vperm.xlu0 %991, %v47_v18  }
  0x26   :  { %214 = vperm.xlu1 %992, %v60_v19  }
  0x27   :  { %209 = vperm.xlu0 %991, %v59_v20  }
  0x2a   :  { %115 = vperm.xlu1 %992, %v44_v21  }
  0x2b   :  { %110 = vperm.xlu0 %991, %v43_v22  }
  0x2e   :  { %194 = vperm.xlu1 %992, %v56_v23  }
  0x2f   :  { %189 = vperm.xlu0 %991, %v55_v24  }
  0x32   :  { %305 = vperm.xlu1 %992, %v72_v25  }
  0x33   :  { %300 = vperm.xlu0 %991, %v71_v26  }
  0x36   :  { %145 = vperm.xlu1 %992, %v50_v27  }
  0x37   :  { %140 = vperm.xlu0 %991, %v49_v28  }
  0x3a   :  { %224 = vperm.xlu1 %992, %v62_v29   ;;  %v1361_v29 = vld [vmem:[%s1497_s1] ss:$0 sm:$0xff] }
  0x3b   :  { %219 = vperm.xlu0 %991, %v61_v30   ;;  %v1366_v30 = vld [vmem:[%s1498_s0] ss:$0 sm:$0xff] }
  0x3e   :  { %285 = vperm.xlu1 %992, %v68_v31   ;;  %v1371_v31 = vld [vmem:[%s1499_s2] ss:$0 sm:$0xff] }
  0x3f   :  { %280 = vperm.xlu0 %991, %v67_v32  }
  0x42   :  { %125 = vperm.xlu1 %992, %v46_v33  }
  0x43   :  { %120 = vperm.xlu0 %991, %v45_v34  }
  0x46   :  { %204 = vperm.xlu1 %992, %v58_v35  }
  0x47   :  { %199 = vperm.xlu0 %991, %v57_v36  }
  0x4a   :  { %315 = vperm.xlu1 %992, %v74_v37  }
  0x4b   :  { %310 = vperm.xlu0 %991, %v73_v38  }
  0x4e   :  { %395 = vperm.xlu1 %992, %v84_v39  }
  0x4f   :  { %390 = vperm.xlu0 %991, %v83_v40  }
  0x52   :  { %295 = vperm.xlu1 %992, %v70_v41  }
  0x53   :  { %290 = vperm.xlu0 %991, %v69_v42  }
  0x56   :  { %375 = vperm.xlu1 %992, %v80_v43  }
  0x57   :  { %370 = vperm.xlu0 %991, %v79_v44  }
  0x5a   :  { %405 = vperm.xlu1 %992, %v86_v45  }
  0x5b   :  { %400 = vperm.xlu0 %991, %v85_v46  }
  0x5e   :  { %385 = vperm.xlu1 %992, %v82_v47  }
  0x5f   :  { %380 = vperm.xlu0 %991, %v81_v48  }
  0x62   :  { %523 = vperm.xlu1 %992, %v501_v49  }
  0x63   :  { %518 = vperm.xlu0 %991, %v500_v50  }
  0x66   :  { %533 = vperm.xlu1 %992, %v503_v51  }
  0x67   :  { %528 = vperm.xlu0 %991, %v502_v52  }
  0x6a   :  { %579 = vperm.xlu1 %992, %v513_v53  }
  0x6b   :  { %574 = vperm.xlu0 %991, %v512_v54  }
  0x6e   :  { %559 = vperm.xlu1 %992, %v509_v55  }
  0x6f   :  { %554 = vperm.xlu0 %991, %v508_v56  }
  0x72   :  { %564 = vperm.xlu1 %992, %v510_v57  }
  0x73   :  { %584 = vperm.xlu0 %991, %v514_v58  }
  0x76   :  { %569 = vperm.xlu1 %992, %v511_v59  }
  0x77   :  { %589 = vperm.xlu0 %991, %v515_v60  }
  0x7a   :  { %857 = vperm.xlu1 %992, %v847_v61  }
  0x7b   :  { %852 = vperm.xlu0 %991, %v846_v62  }
  0x7e   :  { %867 = vperm.xlu1 %992, %v849_v63  }
  0x7f   :  { %862 = vperm.xlu0 %991, %v848_v0  }
  0x81   :  { %v170_v1 = vpop.permute.xlu1 %169 }
  0x82   :  { %v91_v2 = vpop.permute.xlu0 %90  ;;  %v233_v36 = vmul.f32 %v1361_v29, %v170_v1 }
  0x83   :  { %v154_v37 = vmul.f32 %v1366_v30, %v91_v2 }
  0x85   :  { %v175_v5 = vpop.permute.xlu1 %174  ;;  %v245_v43 = vadd.f32 %v233_v36, %v154_v37 }
  0x86   :  { %v96_v6 = vpop.permute.xlu0 %95  ;;  %v234_v32 = vmul.f32 %v1361_v29, %v175_v5 }
  0x87   :  { %v155_v33 = vmul.f32 %v1366_v30, %v96_v6 }
  0x89   :  { %v266_v7 = vpop.permute.xlu1 %265  ;;  %v246_v39 = vadd.f32 %v234_v32, %v155_v33 }
  0x8a   :  { %v261_v8 = vpop.permute.xlu0 %260  ;;  %v325_v38 = vmul.f32 %v1371_v31, %v266_v7 }
  0x8b   :  { %v324_v40 = vmul.f32 %v1371_v31, %v261_v8 }
  0x8c   :  { %v337_v44 = vadd.f32 %v325_v38, %v246_v39 }
  0x8d   :  { %v106_v9 = vpop.permute.xlu1 %105  ;;  %v336_v47 = vadd.f32 %v324_v40, %v245_v43 }
  0x8e   :  { %v101_v10 = vpop.permute.xlu0 %100  ;;  %v157_v48 = vmul.f32 %v1366_v30, %v106_v9 }
  0x8f   :  { %v156_v54 = vmul.f32 %v1366_v30, %v101_v10 }
  0x91   :  { %v185_v11 = vpop.permute.xlu1 %184 }
  0x92   :  { %v180_v12 = vpop.permute.xlu0 %179  ;;  %v236_v45 = vmul.f32 %v1361_v29, %v185_v11 }
  0x93   :  { %v235_v49 = vmul.f32 %v1361_v29, %v180_v12 }
  0x94   :  { %v248_v55 = vadd.f32 %v236_v45, %v157_v48 }
  0x95   :  { %v276_v13 = vpop.permute.xlu1 %275  ;;  %v247_v58 = vadd.f32 %v235_v49, %v156_v54 }
  0x96   :  { %v271_v14 = vpop.permute.xlu0 %270  ;;  %v327_v50 = vmul.f32 %v1371_v31, %v276_v13 }
  0x97   :  { %v326_v56 = vmul.f32 %v1371_v31, %v271_v14 }
  0x98   :  { %v339_v59 = vadd.f32 %v327_v50, %v248_v55 }
  0x99   :  { %v356_v15 = vpop.permute.xlu1 %355  ;;  %v338_v0 = vadd.f32 %v326_v56, %v247_v58 }
  0x9a   :  { %v351_v16 = vpop.permute.xlu0 %350  ;;  %v409_v46 = vadd.f32 %v356_v15, %v337_v44 }
  0x9b   :  { %v408_v53 = vadd.f32 %v351_v16, %v336_v47 }
  0x9c   :  { %v895_v57 = vmul.f32 -1.442695, %v409_v46 }
  0x9d   :  { %v366_v17 = vpop.permute.xlu1 %365  ;;  %v894_v62 = vmul.f32 -1.442695, %v408_v53 }
  0x9e   :  { %v361_v18 = vpop.permute.xlu0 %360  ;;  %v411_v63 = vadd.f32 %v366_v17, %v339_v59  ;;  %993 = vpow2.f32 %v895_v57 }
  0x9f   :  { %v410_v1 = vadd.f32 %v361_v18, %v338_v0  ;;  %995 = vpow2.f32 %v894_v62 }
  0xa0   :  { %v897_v6 = vmul.f32 -1.442695, %v411_v63 }
  0xa1   :  { %v136_v19 = vpop.permute.xlu1 %135  ;;  %v896_v11 = vmul.f32 -1.442695, %v410_v1 }
  0xa2   :  { %v131_v20 = vpop.permute.xlu0 %130  ;;  %v163_v7 = vmul.f32 %v1366_v30, %v136_v19  ;;  %997 = vpow2.f32 %v897_v6 }
  0xa3   :  { %v162_v8 = vmul.f32 %v1366_v30, %v131_v20  ;;  %999 = vpow2.f32 %v896_v11 }
  0xa5   :  { %v215_v21 = vpop.permute.xlu1 %214 }
  0xa6   :  { %v210_v22 = vpop.permute.xlu0 %209  ;;  %v242_v4 = vmul.f32 %v1361_v29, %v215_v21 }
  0xa7   :  { %v241_v5 = vmul.f32 %v1361_v29, %v210_v22 }
  0xa8   :  { %v254_v14 = vadd.f32 %v242_v4, %v163_v7  ;;  %v994_v22 = vpop.eup %993 }
  0xa9   :  { %v1350_v23 = vpop.permute.xlu1 %115  ;;  %v253_v15 = vadd.f32 %v241_v5, %v162_v8  ;;  %v996_v36 = vpop.eup %995  ;;  %v433_v43 = vadd.f32 1.0, %v994_v22 }
  0xaa   :  { %v1352_v24 = vpop.permute.xlu0 %110  ;;  %v159_v32 = vmul.f32 %v1366_v30, %v1350_v23  ;;  %v432_v47 = vadd.f32 1.0, %v996_v36 }
  0xab   :  { %v158_v33 = vmul.f32 %v1366_v30, %v1352_v24 }
  0xad   :  { %v1354_v25 = vpop.permute.xlu1 %194 }
  0xae   :  { %v1356_v26 = vpop.permute.xlu0 %189  ;;  %v238_v19 = vmul.f32 %v1361_v29, %v1354_v25 }
  0xaf   :  { %v237_v20 = vmul.f32 %v1361_v29, %v1356_v26 }
  0xb0   :  { %v250_v45 = vadd.f32 %v238_v19, %v159_v32 }
  0xb1   :  { %v306_v27 = vpop.permute.xlu1 %305  ;;  %v249_v46 = vadd.f32 %v237_v20, %v158_v33 }
  0xb2   :  { %v301_v28 = vpop.permute.xlu0 %300  ;;  %v333_v9 = vmul.f32 %v1371_v31, %v306_v27 }
  0xb3   :  { %v332_v10 = vmul.f32 %v1371_v31, %v301_v28 }
  0xb4   :  { %v345_v16 = vadd.f32 %v333_v9, %v254_v14 }
  0xb5   :  { %v1375_v34 = vpop.permute.xlu1 %145  ;;  %v344_v17 = vadd.f32 %v332_v10, %v253_v15 }
  0xb6   :  { %v1377_v35 = vpop.permute.xlu0 %140  ;;  %v165_v24 = vmul.f32 %v1366_v30, %v1375_v34 }
  0xb7   :  { %v164_v48 = vmul.f32 %v1366_v30, %v1377_v35 }
  0xb9   :  { %v225_v41 = vpop.permute.xlu1 %224 }
  0xba   :  { %v1383_v42 = vpop.permute.xlu0 %219  ;;  %v244_v25 = vmul.f32 %v1361_v29, %v225_v41 }
  0xbb   :  { %v243_v23 = vmul.f32 %v1361_v29, %v1383_v42  ;;  %v998_v42 = vpop.eup %997 }
  0xbc   :  { %v1000_v58 = vpop.eup %999  ;;  %v435_v1 = vadd.f32 1.0, %v998_v42  ;;  %v493_v42 = vld [vmem:[%s1496_s7 + $0x48] sm:$0xff] }
  0xbd   :  { %v286_v51 = vpop.permute.xlu1 %285  ;;  %v255_v55 = vadd.f32 %v243_v23, %v164_v48 }
  0xbe   :  { %v281_v52 = vpop.permute.xlu0 %280  ;;  %v329_v37 = vmul.f32 %v1371_v31, %v286_v51 }
  0xbf   :  { %v328_v38 = vmul.f32 %v1371_v31, %v281_v52  ;;  %v256_v52 = vadd.f32 %v244_v25, %v165_v24 }
  0xc0   :  { %v341_v50 = vadd.f32 %v329_v37, %v250_v45 }
  0xc1   :  { %v1391_v60 = vpop.permute.xlu1 %125  ;;  %v340_v51 = vadd.f32 %v328_v38, %v249_v46 }
  0xc2   :  { %v1393_v61 = vpop.permute.xlu0 %120  ;;  %v161_v35 = vmul.f32 %v1366_v30, %v1391_v60  ;;  %v434_v60 = vadd.f32 1.0, %v1000_v58  ;;  %v496_v58 = vld [vmem:[%s1496_s7 + $0x60] sm:$0xff] }
  0xc3   :  { %v160_v4 = vmul.f32 %v1366_v30, %v1393_v61 }
  0xc5   :  { %v205_v2 = vpop.permute.xlu1 %204 }
  0xc6   :  { %v200_v3 = vpop.permute.xlu0 %199  ;;  %v240_v56 = vmul.f32 %v1361_v29, %v205_v2 }
  0xc7   :  { %v239_v59 = vmul.f32 %v1361_v29, %v200_v3 }
  0xc8   :  { %v252_v7 = vadd.f32 %v240_v56, %v161_v35  ;;  %v494_v56 = vld [vmem:[%s1496_s7 + $0x50] sm:$0xff]  ;;  %v488_v35 = vld [vmem:[%s1496_s7 + $0x20] sm:$0xff] }
  0xc9   :  { %v316_v12 = vpop.permute.xlu1 %315  ;;  %v251_v10 = vadd.f32 %v239_v59, %v160_v4  ;;  %v497_v59 = vld [vmem:[%s1496_s7 + $0x68] sm:$0xff]  ;;  %v491_v4 = vld [vmem:[%s1496_s7 + $0x38] sm:$0xff] }
  0xca   :  { %v311_v13 = vpop.permute.xlu0 %310  ;;  %v335_v49 = vmul.f32 %v1371_v31, %v316_v12 }
  0xcb   :  { %v334_v41 = vmul.f32 %v1371_v31, %v311_v13 }
  0xcc   :  { %v347_v63 = vadd.f32 %v335_v49, %v256_v52 }
  0xcd   :  { %v396_v18 = vpop.permute.xlu1 %395  ;;  %v346_v0 = vadd.f32 %v334_v41, %v255_v55  ;;  %v486_v55 = vld [vmem:[%s1496_s7 + $0x10] sm:$0xff] }
  0xce   :  { %v391_v21 = vpop.permute.xlu0 %390  ;;  %v417_v27 = vadd.f32 %v396_v18, %v345_v16 }
  0xcf   :  { %v416_v28 = vadd.f32 %v391_v21, %v344_v17 }
  0xd0   :  { %v899_v39 = vmul.f32 -1.442695, %v417_v27 }
  0xd1   :  { %v898_v40 = vmul.f32 -1.442695, %v416_v28  ;;  %v296_v44 = vpop.permute.xlu1 %295 }
  0xd2   :  { %v291_v26 = vpop.permute.xlu0 %290  ;;  %1001 = vpow2.f32 %v899_v39  ;;  %v331_v62 = vmul.f32 %v1371_v31, %v296_v44 }
  0xd3   :  { %1003 = vpow2.f32 %v898_v40  ;;  %v330_v2 = vmul.f32 %v1371_v31, %v291_v26 }
  0xd4   :  { %1005 = vrcp.f32 %v433_v43  ;;  %v343_v11 = vadd.f32 %v331_v62, %v252_v7  ;;  %v489_v62 = vld [vmem:[%s1496_s7 + $0x28] sm:$0xff] }
  0xd5   :  { %v376_v53 = vpop.permute.xlu1 %375  ;;  %1007 = vrcp.f32 %v432_v47  ;;  %v342_v30 = vadd.f32 %v330_v2, %v251_v10 }
  0xd6   :  { %v371_v54 = vpop.permute.xlu0 %370  ;;  %v413_v57 = vadd.f32 %v376_v53, %v341_v50 }
  0xd7   :  { %v412_v34 = vadd.f32 %v371_v54, %v340_v51  ;;  %v485_v54 = vld [vmem:[%s1496_s7 + $0x8] sm:$0xff] }
  0xd8   :  { %1009 = vtanh.f32 %v413_v57  ;;  %v487_v57 = vld [vmem:[%s1496_s7 + $0x18] sm:$0xff] }
  0xd9   :  { %1011 = vtanh.f32 %v412_v34  ;;  %v406_v5 = vpop.permute.xlu1 %405  ;;  %v495_v34 = vld [vmem:[%s1496_s7 + $0x58] sm:$0xff] }
  0xda   :  { %v401_v6 = vpop.permute.xlu0 %400  ;;  %v419_v8 = vadd.f32 %v406_v5, %v347_v63  ;;  %1013 = vrcp.f32 %v435_v1  ;;  %v498_v63 = vld [vmem:[%s1496_s7 + $0x70] sm:$0xff]  ;;  %v499_v1 = vld [vmem:[%s1496_s7 + $0x78] sm:$0xff] }
  0xdb   :  { %v418_v9 = vadd.f32 %v401_v6, %v346_v0  ;;  %v490_v0 = vld [vmem:[%s1496_s7 + $0x30] sm:$0xff] }
  0xdc   :  { %v1002_v29 = vpop.eup %1001  ;;  %v901_v3 = vmul.f32 -1.442695, %v419_v8 }
  0xdd   :  { %v1004_v12 = vpop.eup %1003  ;;  %v461_v13 = vadd.f32 1.0, %v1002_v29  ;;  %v900_v14 = vmul.f32 -1.442695, %v418_v9  ;;  %v386_v15 = vpop.permute.xlu1 %385 }
  0xde   :  { %v381_v16 = vpop.permute.xlu0 %380  ;;  %1015 = vpow2.f32 %v901_v3  ;;  %v415_v31 = vadd.f32 %v386_v15, %v343_v11  ;;  %v1006_v61 = vpop.eup %1005  ;;  %v460_v18 = vadd.f32 1.0, %v1004_v12 }
  0xdf   :  { %1017 = vrcp.f32 %v434_v60  ;;  %v414_v17 = vadd.f32 %v381_v16, %v342_v30  ;;  %v1008_v21 = vpop.eup %1007 }
  0xe0   :  { %1019 = vrcp.f32 %v461_v13 }
  0xe1   :  { %1021 = vpow2.f32 %v900_v14  ;;  %v524_v2 = vpop.permute.xlu1 %523 }
  0xe2   :  { %v1010_v22 = vpop.eup %1009  ;;  %1023 = vtanh.f32 %v415_v31  ;;  %v519_v5 = vpop.permute.xlu0 %518 }
  0xe3   :  { %v1012_v19 = vpop.eup %1011  ;;  %v473_v20 = vmul.f32 %v1010_v22, %v1006_v61  ;;  %1025 = vtanh.f32 %v414_v17 }
  0xe4   :  { %1027 = vrcp.f32 %v460_v18  ;;  %v472_v27 = vmul.f32 %v1012_v19, %v1008_v21  ;;  %v1014_v28 = vpop.eup %1013 }
  0xe5   :  { %1029 = vtanh.f32 %v473_v20  ;;  %v534_v6 = vpop.permute.xlu1 %533 }
  0xe6   :  { %1031 = vtanh.f32 %v472_v27  ;;  %v529_v7 = vpop.permute.xlu0 %528 }
  0xe8   :  { %v1016_v32 = vpop.eup %1015 }
  0xe9   :  { %v1018_v33 = vpop.eup %1017  ;;  %v463_v36 = vadd.f32 1.0, %v1016_v32  ;;  %v580_v8 = vpop.permute.xlu1 %579 }
  0xea   :  { %v1020_v37 = vpop.eup %1019  ;;  %v575_v9 = vpop.permute.xlu0 %574 }
  0xeb   :  { %v1022_v38 = vpop.eup %1021  ;;  %1033 = vrcp.f32 %v463_v36 }
  0xec   :  { %v1024_v39 = vpop.eup %1023  ;;  %v462_v40 = vadd.f32 1.0, %v1022_v38 }
  0xed   :  { %v1026_v43 = vpop.eup %1025  ;;  %v475_v25 = vmul.f32 %v1024_v39, %v1014_v28  ;;  %v560_v60 = vpop.permute.xlu1 %559 }
  0xee   :  { %v1028_v44 = vpop.eup %1027  ;;  %1035 = vrcp.f32 %v462_v40  ;;  %v474_v26 = vmul.f32 %v1026_v43, %v1018_v33  ;;  %v555_v10 = vpop.permute.xlu0 %554 }
  0xef   :  { %v1030_v45 = vpop.eup %1029  ;;  %1037 = vtanh.f32 %v475_v25 }
  0xf0   :  { %v1032_v46 = vpop.eup %1031  ;;  %1039 = vtanh.f32 %v474_v26  ;;  %v481_v23 = vmul.f32 %v1030_v45, %v1020_v37 }
  0xf1   :  { %v480_v47 = vmul.f32 %v1032_v46, %v1028_v44  ;;  %v565_v15 = vpop.permute.xlu1 %564 }
  0xf2   :  { %v585_v16 = vpop.permute.xlu0 %584 }
  0xf3   :  { %v978_v24 = vpack.c.bf16 %v481_v23, %v480_v47 }
  0xf5   :  { %979 = vmatprep.subr.bf16.mxu0 %v978_v24  ;;  %986 = vmatprep.subr.bf16.mxu1 %v978_v24  ;;  %v1034_v48 = vpop.eup %1033  ;;  %v570_v40 = vpop.permute.xlu1 %569 }
  0xf6   :  { %981 = vmatpush3.bf16.msra.mxu0 %v978_v24  ;;  %988 = vmatpush3.bf16.msra.mxu1 %v978_v24  ;;  %v590_v43 = vpop.permute.xlu0 %589 }
  0xf8   :  { %v1036_v49 = vpop.eup %1035 }
  0xf9   :  { %v1038_v41 = vpop.eup %1037 }
  0xfa   :  { %v1040_v50 = vpop.eup %1039  ;;  %v483_v51 = vmul.f32 %v1038_v41, %v1034_v48 }
  0xfb   :  { %v482_v52 = vmul.f32 %v1040_v50, %v1036_v49 }
  0xfd   :  { %v982_v53 = vpack.c.bf16 %v483_v51, %v482_v52 }
  0xff   :  { %983 = vmatprep.subr.bf16.mxu0 %v982_v53  ;;  %987 = vmatprep.subr.bf16.mxu1 %v982_v53 }
 0x100   :  { %985 = vmatpush3.bf16.msra.mxu0 %v982_v53  ;;  %989 = vmatpush3.bf16.msra.mxu1 %v982_v53 }
 0x103   :  { %955 = vmatmul.mubr.msk.f32.vlgmr.msra.gmra.mrb[0].mxu0 %vm592_vm0, %v485_v54  ;;  %967 = vmatmul.mubr.msk.f32.vlgmr.msra.gmra.mrb[0].mxu1 %vm592_vm0, %v493_v42 }
 0x104   :  { %957 = vmatprep.mubr.msk.f32.mxu0 %vm592_vm0, %v486_v55  ;;  %969 = vmatprep.mubr.msk.f32.mxu1 %vm592_vm0, %v494_v56 }
 0x107   :  { %958 = vmatmul.mubr.msk.f32.gmra.mrb[2].mxu0 %vm592_vm0, %v487_v57  ;;  %970 = vmatmul.mubr.msk.f32.gmra.mrb[2].mxu1 %vm592_vm0, %v495_v34 }
 0x108   :  { %972 = vmatprep.mubr.msk.f32.mxu1 %vm592_vm0, %v496_v58  ;;  %960 = vmatprep.mubr.msk.f32.mxu0 %vm592_vm0, %v488_v35 }
 0x10b   :  { %973 = vmatmul.mubr.msk.f32.gmra.mrb[4].mxu1 %vm592_vm0, %v497_v59  ;;  %961 = vmatmul.mubr.msk.f32.gmra.mrb[4].mxu0 %vm592_vm0, %v489_v62 }
 0x10c   :  { %975 = vmatprep.mubr.msk.f32.mxu1 %vm592_vm0, %v498_v63  ;;  %963 = vmatprep.mubr.msk.f32.mxu0 %vm592_vm0, %v490_v0 }
 0x10f   :  { %976 = vmatmul.mubr.msk.f32.gmra.mrb[6].mxu1 %vm592_vm0, %v499_v1  ;;  %964 = vmatmul.mubr.msk.f32.gmra.mrb[6].mxu0 %vm592_vm0, %v491_v4 }
 0x1d6   :  { %v956_v29 = vpop.f32.mrb[0].mxu0  ;;  %v968_v3 = vpop.f32.mrb[0].mxu1 }
 0x1d7   :  { %v713_v11 = vadd.f32 %v956_v29, %v524_v2  ;;  %v707_v12 = vpop.f32.mrb[1].mxu0  ;;  %v743_v13 = vpop.f32.mrb[1].mxu1  ;;  %v749_v27 = vadd.f32 %v968_v3, %v560_v60 }
 0x1d8   :  { %v708_v14 = vadd.f32 %v707_v12, %v519_v5  ;;  %v744_v25 = vadd.f32 %v743_v13, %v555_v10 }
 0x1d9   :  { %v919_v30 = vmul.f32 -1.442695, %v713_v11 }
 0x1da   :  { %v918_v31 = vmul.f32 -1.442695, %v708_v14  ;;  %v959_v61 = vpop.f32.mrb[2].mxu0  ;;  %v971_v17 = vpop.f32.mrb[2].mxu1 }
 0x1db   :  { %1041 = vpow2.f32 %v919_v30  ;;  %v723_v18 = vadd.f32 %v959_v61, %v534_v6  ;;  %v717_v21 = vpop.f32.mrb[3].mxu0  ;;  %v753_v22 = vpop.f32.mrb[3].mxu1  ;;  %v759_v26 = vadd.f32 %v971_v17, %v570_v40 }
 0x1dc   :  { %1043 = vpow2.f32 %v918_v31  ;;  %v718_v19 = vadd.f32 %v717_v21, %v529_v7  ;;  %v754_v42 = vadd.f32 %v753_v22, %v565_v15  ;;  %v853_v30 = vpop.permute.xlu0 %852  ;;  %v858_v17 = vpop.permute.xlu1 %857 }
 0x1dd   :  { %v921_v20 = vmul.f32 -1.442695, %v723_v18 }
 0x1de   :  { %v920_v28 = vmul.f32 -1.442695, %v718_v19  ;;  %v974_v32 = vpop.f32.mrb[4].mxu1  ;;  %v962_v33 = vpop.f32.mrb[4].mxu0 }
 0x1df   :  { %1045 = vpow2.f32 %v921_v20  ;;  %v769_v36 = vadd.f32 %v974_v32, %v580_v8  ;;  %v763_v37 = vpop.f32.mrb[5].mxu1  ;;  %v727_v38 = vpop.f32.mrb[5].mxu0 }
 0x1e0   :  { %1047 = vpow2.f32 %v920_v28  ;;  %v764_v39 = vadd.f32 %v763_v37, %v575_v9  ;;  %v868_v38 = vpop.permute.xlu1 %867 }
 0x1e1   :  { %v923_v44 = vmul.f32 -1.442695, %v769_v36  ;;  %1049 = vtanh.f32 %v749_v27  ;;  %v863_v36 = vpop.permute.xlu0 %862 }
 0x1e2   :  { %v922_v45 = vmul.f32 -1.442695, %v764_v39  ;;  %v977_v46 = vpop.f32.mrb[6].mxu1  ;;  %v965_v23 = vpop.f32.mrb[6].mxu0 }
 0x1e3   :  { %1051 = vpow2.f32 %v923_v44  ;;  %v779_v47 = vadd.f32 %v977_v46, %v590_v43  ;;  %v773_v24 = vpop.f32.mrb[7].mxu1  ;;  %v735_v48 = vpop.f32.mrb[7].mxu0  ;;  %v884_v23 = vstv %s1500_s10 }
 0x1e4   :  { %1053 = vpow2.f32 %v922_v45  ;;  %v774_v49 = vadd.f32 %v773_v24, %v585_v16 }
 0x1e5   :  { %v1042_v41 = vpop.eup %1041  ;;  %1055 = vtanh.f32 %v744_v25  ;;  %v925_v50 = vmul.f32 -1.442695, %v779_v47 }
 0x1e6   :  { %v1044_v51 = vpop.eup %1043  ;;  %v795_v52 = vadd.f32 1.0, %v1042_v41  ;;  %1057 = vtanh.f32 %v759_v26  ;;  %v924_v53 = vmul.f32 -1.442695, %v774_v49 }
 0x1e7   :  { %v794_v54 = vadd.f32 1.0, %v1044_v51  ;;  %1059 = vpow2.f32 %v925_v50 }
 0x1e8   :  { %1061 = vrcp.f32 %v795_v52 }
 0x1e9   :  { %v1046_v55 = vpop.eup %1045  ;;  %1063 = vrcp.f32 %v794_v54 }
 0x1ea   :  { %v1048_v56 = vpop.eup %1047  ;;  %v797_v57 = vadd.f32 1.0, %v1046_v55  ;;  %1065 = vpow2.f32 %v924_v53 }
 0x1eb   :  { %v796_v34 = vadd.f32 1.0, %v1048_v56  ;;  %1067 = vtanh.f32 %v754_v42  ;;  %v1050_v58 = vpop.eup %1049 }
 0x1ec   :  { %1069 = vrcp.f32 %v797_v57 }
 0x1ed   :  { %v1052_v35 = vpop.eup %1051  ;;  %1071 = vrcp.f32 %v796_v34 }
 0x1ee   :  { %v1054_v59 = vpop.eup %1053  ;;  %v823_v63 = vadd.f32 1.0, %v1052_v35 }
 0x1ef   :  { %v1056_v62 = vpop.eup %1055  ;;  %v822_v1 = vadd.f32 1.0, %v1054_v59 }
 0x1f0   :  { %v1058_v0 = vpop.eup %1057  ;;  %1073 = vrcp.f32 %v823_v63 }
 0x1f1   :  { %v1060_v4 = vpop.eup %1059  ;;  %1075 = vrcp.f32 %v822_v1 }
 0x1f2   :  { %v1062_v2 = vpop.eup %1061  ;;  %v825_v7 = vadd.f32 1.0, %v1060_v4 }
 0x1f3   :  { %v1064_v5 = vpop.eup %1063  ;;  %v835_v6 = vmul.f32 %v1062_v2, %v1050_v58 }
 0x1f4   :  { %v1066_v8 = vpop.eup %1065  ;;  %v834_v9 = vmul.f32 %v1064_v5, %v1056_v62 }
 0x1f5   :  { %v1068_v60 = vpop.eup %1067  ;;  %1077 = vtanh.f32 %v835_v6  ;;  %v824_v10 = vadd.f32 1.0, %v1066_v8 }
 0x1f6   :  { %v1070_v29 = vpop.eup %1069  ;;  %1079 = vtanh.f32 %v834_v9 }
 0x1f7   :  { %v1072_v3 = vpop.eup %1071  ;;  %v837_v11 = vmul.f32 %v1070_v29, %v1058_v0  ;;  %1081 = vrcp.f32 %v825_v7 }
 0x1f8   :  { %v836_v12 = vmul.f32 %v1072_v3, %v1068_v60  ;;  %1083 = vrcp.f32 %v824_v10 }
 0x1f9   :  { %1085 = vtanh.f32 %v837_v11 }
 0x1fa   :  { %1087 = vtanh.f32 %v836_v12  ;;  %v1074_v13 = vpop.eup %1073 }
 0x1fb   :  { %v1076_v14 = vpop.eup %1075 }
 0x1ff   :  { %v1078_v15 = vpop.eup %1077 }
 0x200   :  { %v1080_v16 = vpop.eup %1079  ;;  %v843_v31 = vmul.f32 %v1078_v15, %v1074_v13 }
 0x201   :  { %v1082_v61 = vpop.eup %1081  ;;  %v842_v18 = vmul.f32 %v1080_v16, %v1076_v14 }
 0x202   :  { %v1084_v21 = vpop.eup %1083  ;;  %v871_v22 = vmul.f32 %v858_v17, %v843_v31 }
 0x203   :  { %v1086_v19 = vpop.eup %1085  ;;  %v870_v20 = vmul.f32 %v853_v30, %v842_v18 }
 0x204   :  { %v1088_v27 = vpop.eup %1087  ;;  %v845_v28 = vmul.f32 %v1086_v19, %v1082_v61 }
 0x205   :  { %v874_v32 = vadd.f32 %v871_v22, %v870_v20  ;;  %v844_v33 = vmul.f32 %v1088_v27, %v1084_v21 }
 0x206   :  { %v873_v39 = vmul.f32 %v868_v38, %v845_v28 }
 0x207   :  { %v872_v37 = vmul.f32 %v863_v36, %v844_v33 }
 0x209   :  { %v875_v40 = vadd.f32 %v874_v32, %v872_v37 }
 0x20b   :  { %v876_v43 = vadd.f32 %v875_v40, %v873_v39 }
 0x20d   :  { %v877_v25 = vrot.slane %v876_v43, 4 }
 0x20f   :  { %v878_v44 = vadd.f32 %v877_v25, %v876_v43 }
 0x211   :  { %v879_v26 = vrot.slane %v878_v44, 2 }
 0x213   :  { %v880_v45 = vadd.f32 %v879_v26, %v878_v44 }
 0x215   :  { %v881_v46 = vrot.slane %v880_v45, 1 }
 0x217   :  { %v882_v47 = vadd.f32 %v881_v46, %v880_v45 }
 0x219   :  { %v885_v24 = vadd.f32 %v884_v23, %v882_v47 }
 0x21b   :  { %886 = vst [vmem:[%s1501_s11] sm:$0x1] %v885_v24 }

</bundles_post_ra>
